<compile_context>
chip_gen: v6e
topology: v6e:2x2x1
jax: 0.10.0
libtpu: 0.0.40
codegen_flags: <defaults>
</compile_context>

<pallas_src>
import functools

import jax
import jax.numpy as jnp
from jax.experimental import pallas as pl
from jax.experimental.pallas import tpu as pltpu

LANE = 128


def _round_up(n: int, m: int) -> int:
    return ((n + m - 1) // m) * m


def mlp_kernel(x_ref, w1_ref, b1_ref, w2_ref, b2_ref, w3_ref, b3_ref, o_ref):
    # x_ref : (tb, D_in)    f32 input tile (cast to bf16 in-kernel)
    # w1_ref: (D_in, H2p)   bf16      b1_ref: (1, H2p)  f32
    # w2_ref: (H2p, Hp)     bf16      b2_ref: (1, Hp)   f32
    # w3_ref: (Hp, OUTp)    bf16      b3_ref: (1, OUTp) f32  (col 0 real, rest 0)
    # o_ref : (1, tb)       f32 lane-dense output row (real column, transposed)

    # fc1: in-kernel bf16 cast of x (free VPU slots), f32 accumulate, f32 bias+ReLU
    x = x_ref[...].astype(jnp.bfloat16)
    h1 = jnp.dot(x, w1_ref[...], preferred_element_type=jnp.float32)
    h1 = jnp.maximum(h1 + b1_ref[...], 0.0)

    # fc2
    h2 = jnp.dot(h1.astype(jnp.bfloat16), w2_ref[...],
                 preferred_element_type=jnp.float32)
    h2 = jnp.maximum(h2 + b2_ref[...], 0.0)

    # fc3: full-width (padded to 128 cols) MXU matmul; only column 0 is real.
    y = jnp.dot(h2.astype(jnp.bfloat16), w3_ref[...],
                preferred_element_type=jnp.float32) + b3_ref[...]

    # Emit only the real column, transposed to a lane-dense (1, tb) row.
    # Full tiling-aligned (tb,128)->(128,tb) XLU transpose, then row slice.
    o_ref[...] = y.T[:1, :]


def init_mlp_params(key, input_size, hidden_size):
    """torch.nn.Linear default init: U(-1/sqrt(fan_in), 1/sqrt(fan_in)).
    Weights are stored pre-transposed as [in, out]; biases as [out]."""
    def linear(k, fan_in, fan_out):
        kw, kb = jax.random.split(k)
        bound = 1.0 / jnp.sqrt(jnp.float32(fan_in))
        w = jax.random.uniform(kw, (fan_in, fan_out), jnp.float32, -bound, bound)
        b = jax.random.uniform(kb, (fan_out,), jnp.float32, -bound, bound)
        return w, b

    k1, k2, k3 = jax.random.split(key, 3)
    w1, b1 = linear(k1, input_size, hidden_size * 2)
    w2, b2 = linear(k2, hidden_size * 2, hidden_size)
    w3, b3 = linear(k3, hidden_size, 1)
    return (w1, b1, w2, b2, w3, b3)


def pack_params(params):
    """Zero-pad feature dims to lane multiples and cast weights to bf16.
    Padding is zeros -> real output columns are unchanged (ReLU(0+0)=0)."""
    w1, b1, w2, b2, w3, b3 = params
    d_in, h2 = w1.shape
    h = w2.shape[1]
    h2p = _round_up(h2, LANE)
    hp = _round_up(h, LANE)
    outp = LANE  # output dim 1 padded to one full lane group

    def pad_w(w, rows, cols):
        return jnp.pad(w, ((0, rows - w.shape[0]), (0, cols - w.shape[1])))

    def pad_b(b, cols):
        return jnp.pad(b.reshape(1, -1), ((0, 0), (0, cols - b.shape[-1])))

    w1p = pad_w(w1, d_in, h2p).astype(jnp.bfloat16)
    w2p = pad_w(w2, h2p, hp).astype(jnp.bfloat16)
    w3p = pad_w(w3, hp, outp).astype(jnp.bfloat16)
    b1p = pad_b(b1, h2p).astype(jnp.float32)
    b2p = pad_b(b2, hp).astype(jnp.float32)
    b3p = pad_b(b3, outp).astype(jnp.float32)
    return (w1p, b1p, w2p, b2p, w3p, b3p)


def _choose_tb(batch: int) -> int:
    """Batch tile: keep >=2 'parallel' grid steps when the batch allows (so both
    v7x TensorCores get work) while making each step 128-512 rows to amortise
    per-step pipeline overhead on single-TC v5e/v6e.  tb is a multiple of 128
    (lane-dense (1, tb) output block) unless it covers the whole (small) batch."""
    if batch <= 128:
        return _round_up(batch, 8)           # single step; batch padded to tb
    tb = min(512, batch // 2)                # >=2 steps, <=512 rows/step
    return max(128, (tb // 128) * 128)


@functools.partial(jax.jit, static_argnames=("tb",))
def mlp_forward(x, packed_params, *, tb=None):
    """Fused MLP forward. x: [B, D_in] (any float dtype; semantics of x.float())."""
    w1, b1, w2, b2, w3, b3 = packed_params
    B, d_in = x.shape
    h2p = w1.shape[1]
    hp = w2.shape[1]
    outp = w3.shape[1]
    assert w1.shape[0] == d_in

    if tb is None:
        tb = _choose_tb(B)

    # Handle non-divisible batches with zero padding (sliced off at the end).
    b_pad = _round_up(B, tb)
    x_in = x.astype(jnp.float32)
    if b_pad != B:
        x_in = jnp.pad(x_in, ((0, b_pad - B), (0, 0)))
    grid = (b_pad // tb,)

    # Weights/biases: constant index maps -> DMA'd once; Buffered(1) halves
    # their VMEM footprint.  Per-step x / output specs stay double-buffered.
    const = dict(pipeline_mode=pl.Buffered(1))

    flops = 2 * b_pad * (d_in * h2p + h2p * hp + hp * outp)
    bytes_accessed = (
        b_pad * d_in * 4                                               # x (f32)
        + sum(int(a.size) * a.dtype.itemsize for a in packed_params)  # weights
        + b_pad * 4                                                    # output
    )
    cost = pl.CostEstimate(flops=flops, transcendentals=0,
                           bytes_accessed=int(bytes_accessed))

    out_row = pl.pallas_call(
        mlp_kernel,
        out_shape=jax.ShapeDtypeStruct((1, b_pad), jnp.float32),
        grid_spec=pltpu.PrefetchScalarGridSpec(
            num_scalar_prefetch=0,
            grid=grid,
            in_specs=[
                pl.BlockSpec((tb, d_in), lambda i: (i, 0)),            # x tile (f32)
                pl.BlockSpec((d_in, h2p), lambda i: (0, 0), **const),  # w1
                pl.BlockSpec((1, h2p), lambda i: (0, 0), **const),     # b1
                pl.BlockSpec((h2p, hp), lambda i: (0, 0), **const),    # w2
                pl.BlockSpec((1, hp), lambda i: (0, 0), **const),      # b2
                pl.BlockSpec((hp, outp), lambda i: (0, 0), **const),   # w3 (padded)
                pl.BlockSpec((1, outp), lambda i: (0, 0), **const),    # b3 (padded)
            ],
            out_specs=pl.BlockSpec((1, tb), lambda i: (0, i)),          # thin output
        ),
        compiler_params=pltpu.CompilerParams(
            dimension_semantics=("parallel",),
        ),
        cost_estimate=cost,
    )(x_in, w1, b1, w2, b2, w3, b3)

    # (1, b_pad) -> (b_pad, 1) is a view-level reshape; drop any batch padding.
    out = out_row.reshape(b_pad, 1)
    if b_pad != B:
        out = out[:B]
    return out


def mlp_reference(x, params):
    """Plain-JAX f32 reference of the PyTorch forward pass."""
    w1, b1, w2, b2, w3, b3 = params
    x = x.astype(jnp.float32)
    h1 = jnp.maximum(x @ w1 + b1[None, :], 0.0)
    h2 = jnp.maximum(h1 @ w2 + b2[None, :], 0.0)
    return h2 @ w3 + b3[None, :]


if __name__ == "__main__":
    input_size = 32
    hidden_size = 32
    batch = 256          # _choose_tb -> tb=128, 2-step "parallel" grid

    key = jax.random.PRNGKey(0)
    kx, kp = jax.random.split(key)
    x = jax.random.normal(kx, (batch, input_size), dtype=jnp.float32)

    params = init_mlp_params(kp, input_size, hidden_size)
    packed = pack_params(params)

    out = mlp_forward(x, packed)
    out = jax.block_until_ready(out)

    ref = mlp_reference(x, params)
    assert out.shape == (batch, 1), out.shape
    # bf16 MXU inputs with f32 accumulation -> relaxed tolerance vs f32 reference.
    max_err = float(jnp.max(jnp.abs(out - ref)))
    assert jnp.allclose(out, ref, atol=5e-2, rtol=5e-2), max_err

    print("KERNEL_OK")
</pallas_src>

<mosaic_0001>
module attributes {stable_mosaic.version = 11 : i64} {
  func.func @mlp_kernel(%arg0: i32, %arg1: memref<128x32xf32, #tpu.memory_space<vmem>>, %arg2: memref<32x128xbf16, #tpu.memory_space<vmem>>, %arg3: memref<1x128xf32, #tpu.memory_space<vmem>>, %arg4: memref<128x128xbf16, #tpu.memory_space<vmem>>, %arg5: memref<1x128xf32, #tpu.memory_space<vmem>>, %arg6: memref<128x128xbf16, #tpu.memory_space<vmem>>, %arg7: memref<1x128xf32, #tpu.memory_space<vmem>>, %arg8: memref<1x128xf32, #tpu.memory_space<vmem>>) attributes {dimension_semantics = [#tpu.dimension_semantics<parallel>], iteration_bounds = array<i64: 2>, scalar_prefetch = 0 : i64, scratch_operands = 0 : i64, tpu.core_type = #tpu.core_type<tc>, window_params = [{transform_indices = @transform_0, window_bounds = array<i64: 128, 32>}, {pipeline_mode = #tpu.pipeline_mode<synchronous>, transform_indices = @transform_1, window_bounds = array<i64: 32, 128>}, {pipeline_mode = #tpu.pipeline_mode<synchronous>, transform_indices = @transform_2, window_bounds = array<i64: 1, 128>}, {pipeline_mode = #tpu.pipeline_mode<synchronous>, transform_indices = @transform_3, window_bounds = array<i64: 128, 128>}, {pipeline_mode = #tpu.pipeline_mode<synchronous>, transform_indices = @transform_4, window_bounds = array<i64: 1, 128>}, {pipeline_mode = #tpu.pipeline_mode<synchronous>, transform_indices = @transform_5, window_bounds = array<i64: 128, 128>}, {pipeline_mode = #tpu.pipeline_mode<synchronous>, transform_indices = @transform_6, window_bounds = array<i64: 1, 128>}, {transform_indices = @transform_7, window_bounds = array<i64: 1, 128>}]} {
    %c0 = arith.constant 0 : index
    %c0_0 = arith.constant 0 : index
    %0 = vector.load %arg1[%c0, %c0_0] : memref<128x32xf32, #tpu.memory_space<vmem>>, vector<128x32xf32>
    %1 = arith.truncf %0 : vector<128x32xf32> to vector<128x32xbf16>
    %c0_1 = arith.constant 0 : index
    %c0_2 = arith.constant 0 : index
    %2 = vector.load %arg2[%c0_1, %c0_2] : memref<32x128xbf16, #tpu.memory_space<vmem>>, vector<32x128xbf16>
    %cst = arith.constant dense<0.000000e+00> : vector<128x128xf32>
    %3 = tpu.matmul %1, %2, %cst {dimension_numbers = #tpu.dot_dimension_numbers<[1], [0], [0], [1], [0, 0, 1, 1], [], []>} : vector<128x32xbf16>, vector<32x128xbf16>, vector<128x128xf32> -> vector<128x128xf32>
    %c0_3 = arith.constant 0 : index
    %c0_4 = arith.constant 0 : index
    %4 = vector.load %arg3[%c0_3, %c0_4] : memref<1x128xf32, #tpu.memory_space<vmem>>, vector<1x128xf32>
    %5 = vector.broadcast %4 : vector<1x128xf32> to vector<128x128xf32>
    %6 = arith.addf %3, %5 : vector<128x128xf32>
    %cst_5 = arith.constant 0.000000e+00 : f32
    %7 = vector.broadcast %cst_5 : f32 to vector<128x128xf32>
    %8 = arith.maximumf %6, %7 : vector<128x128xf32>
    %9 = arith.truncf %8 : vector<128x128xf32> to vector<128x128xbf16>
    %c0_6 = arith.constant 0 : index
    %c0_7 = arith.constant 0 : index
    %10 = vector.load %arg4[%c0_6, %c0_7] : memref<128x128xbf16, #tpu.memory_space<vmem>>, vector<128x128xbf16>
    %cst_8 = arith.constant dense<0.000000e+00> : vector<128x128xf32>
    %11 = tpu.matmul %9, %10, %cst_8 {dimension_numbers = #tpu.dot_dimension_numbers<[1], [0], [0], [1], [0, 0, 1, 1], [], []>} : vector<128x128xbf16>, vector<128x128xbf16>, vector<128x128xf32> -> vector<128x128xf32>
    %c0_9 = arith.constant 0 : index
    %c0_10 = arith.constant 0 : index
    %12 = vector.load %arg5[%c0_9, %c0_10] : memref<1x128xf32, #tpu.memory_space<vmem>>, vector<1x128xf32>
    %13 = vector.broadcast %12 : vector<1x128xf32> to vector<128x128xf32>
    %14 = arith.addf %11, %13 : vector<128x128xf32>
    %cst_11 = arith.constant 0.000000e+00 : f32
    %15 = vector.broadcast %cst_11 : f32 to vector<128x128xf32>
    %16 = arith.maximumf %14, %15 : vector<128x128xf32>
    %17 = arith.truncf %16 : vector<128x128xf32> to vector<128x128xbf16>
    %c0_12 = arith.constant 0 : index
    %c0_13 = arith.constant 0 : index
    %18 = vector.load %arg6[%c0_12, %c0_13] : memref<128x128xbf16, #tpu.memory_space<vmem>>, vector<128x128xbf16>
    %cst_14 = arith.constant dense<0.000000e+00> : vector<128x128xf32>
    %19 = tpu.matmul %17, %18, %cst_14 {dimension_numbers = #tpu.dot_dimension_numbers<[1], [0], [0], [1], [0, 0, 1, 1], [], []>} : vector<128x128xbf16>, vector<128x128xbf16>, vector<128x128xf32> -> vector<128x128xf32>
    %c0_15 = arith.constant 0 : index
    %c0_16 = arith.constant 0 : index
    %20 = vector.load %arg7[%c0_15, %c0_16] : memref<1x128xf32, #tpu.memory_space<vmem>>, vector<1x128xf32>
    %21 = vector.broadcast %20 : vector<1x128xf32> to vector<128x128xf32>
    %22 = arith.addf %19, %21 : vector<128x128xf32>
    %23 = tpu.transpose %22, [1, 0] : vector<128x128xf32> -> vector<128x128xf32>
    %24 = vector.extract_strided_slice %23 {offsets = [0, 0], sizes = [1, 128], strides = [1, 1]} : vector<128x128xf32> to vector<1x128xf32>
    %c0_17 = arith.constant 0 : index
    %c0_18 = arith.constant 0 : index
    %25 = vector.load %arg8[%c0_17, %c0_18] : memref<1x128xf32, #tpu.memory_space<vmem>>, vector<1x128xf32>
    tpu.vector_store %arg8[%c0_17, %c0_18], %24 {strides = array<i32>} : memref<1x128xf32, #tpu.memory_space<vmem>>, vector<1x128xf32>,
    return
  }
  func.func @transform_0(%arg0: i32) -> (i32, i32) {
    %c0_i32 = arith.constant 0 : i32
    %c0_i32_0 = arith.constant 0 : i32
    return %arg0, %c0_i32 : i32, i32
  }
  func.func @transform_1(%arg0: i32) -> (i32, i32) {
    %c0_i32 = arith.constant 0 : i32
    %c0_i32_0 = arith.constant 0 : i32
    %c0_i32_1 = arith.constant 0 : i32
    return %c0_i32, %c0_i32_0 : i32, i32
  }
  func.func @transform_2(%arg0: i32) -> (i32, i32) {
    %c0_i32 = arith.constant 0 : i32
    %c0_i32_0 = arith.constant 0 : i32
    %c0_i32_1 = arith.constant 0 : i32
    return %c0_i32, %c0_i32_0 : i32, i32
  }
  func.func @transform_3(%arg0: i32) -> (i32, i32) {
    %c0_i32 = arith.constant 0 : i32
    %c0_i32_0 = arith.constant 0 : i32
    %c0_i32_1 = arith.constant 0 : i32
    return %c0_i32, %c0_i32_0 : i32, i32
  }
  func.func @transform_4(%arg0: i32) -> (i32, i32) {
    %c0_i32 = arith.constant 0 : i32
    %c0_i32_0 = arith.constant 0 : i32
    %c0_i32_1 = arith.constant 0 : i32
    return %c0_i32, %c0_i32_0 : i32, i32
  }
  func.func @transform_5(%arg0: i32) -> (i32, i32) {
    %c0_i32 = arith.constant 0 : i32
    %c0_i32_0 = arith.constant 0 : i32
    %c0_i32_1 = arith.constant 0 : i32
    return %c0_i32, %c0_i32_0 : i32, i32
  }
  func.func @transform_6(%arg0: i32) -> (i32, i32) {
    %c0_i32 = arith.constant 0 : i32
    %c0_i32_0 = arith.constant 0 : i32
    %c0_i32_1 = arith.constant 0 : i32
    return %c0_i32, %c0_i32_0 : i32, i32
  }
  func.func @transform_7(%arg0: i32) -> (i32, i32) {
    %c0_i32 = arith.constant 0 : i32
    %c0_i32_0 = arith.constant 0 : i32
    return %c0_i32, %arg0 : i32, i32
  }
}

</mosaic_0001>

<bundles_post_ra>
// kernel: mlp_forward.1
= control target key start
LH: loop header
LB: loop body
LE: loop exit
PB: predicated region body
PF: predicated region fallthrough
CT: control target
= control target key end

     0   :  { %12 = vsyncpa [#allocation3], 0  ;;  %s1438_s0 = inlined_call_operand.vmem [shape: f32[256,32], index: 0, kind: input, shape index: {}]   ;;  %s1439_s1 = inlined_call_operand.vmem [shape: bf16[32,128], index: 1, kind: input, shape index: {}]   ;;  %s1440_s2 = inlined_call_operand.vmem [shape: f32[1,128], index: 2, kind: input, shape index: {}]   ;;  %s1441_s3 = inlined_call_operand.vmem [shape: bf16[128,128], index: 3, kind: input, shape index: {}]   ;;  %s1442_s4 = inlined_call_operand.vmem [shape: f32[1,128], index: 4, kind: input, shape index: {}]   ;;  %s1443_s5 = inlined_call_operand.vmem [shape: bf16[128,128], index: 5, kind: input, shape index: {}]   ;;  %s1444_s6 = inlined_call_operand.vmem [shape: f32[1,128], index: 6, kind: input, shape index: {}]   ;;  %s1445_s7 = inlined_call_operand.hbm [shape: f32[1,256], index: 7, kind: output, shape index: {}]  }
   0x1   :  { %14 = vsyncpa [#allocation3 + $0x1], 0  ;;  %s1257_s24 = smov 0   ;;  %s1259_s25 = smov 0  }
   0x2   :  { %s1261_s26 = smov 0   ;;  %s1263_s27 = smov 0  }
   0x3 LB: > { %s932_s28 = sadd.s32 4294967295, %s1214_s27   ;;  %s933_s29 = sadd.s32 4294967294, %s1214_s27   ;;  %s1214_s27 = sphi %s1263_s27, %s1451_s27   ;;  %s1210_s26 = sphi %s1261_s26, %s1450_s26   ;;  %s1206_s25 = sphi %s1259_s25, %s1449_s25   ;;  %s1202_s24 = sphi %s1257_s24, %s1448_s24  }
   0x4   : > { %s1280_s30 = sadd.s32 1, %s1214_s27   ;;  %s179_s8 = sadd.s32 1, %s1210_s26 }
   0x5   : > { %s176_s9 = ssub.s32 %s1214_s27, %s1280_s30  ;;  %p189_p0 = scmp.ne.s32.totalorder %s1210_s26, %s1206_s25 }
   0x6   : > { %p177_p1 = scmp.eq.s32.totalorder %s176_s9, 0  ;;  %p190_p2 = scmp.eq.s32.totalorder %s932_s28, 1 }
   0x7   : > { %p195_p3 = scmp.ne.s32.totalorder %s1206_s25, %s1202_s24  ;;  %p196_p4 = scmp.eq.s32.totalorder %s933_s29, 1 }
   0x8   : > { %s1290_s10 = scalar_select %p177_p1, %s1210_s26, %s179_s8  }
   0x9   : > { %p1292_p5 = por %p190_p2, %p189_p0  ;;  %p1296_p6 = por %p196_p4, %p195_p3 }
   0xa   : > { %p936_p7 = scmp.ge.s32.totalorder %s1214_s27, 1  ;;  %p241_p8 = scmp.lt.s32.totalorder %s1214_s27, 3 }
   0xc   : > { %p242_p9 = pnand %p936_p7, %p241_p8 }
   0xd   : > { %s1305_s15 = sshll.u32 (!%p242_p9), %s932_s28, 4  ;;  %s270_s19 = sand.u32 (!%p242_p9), 1, %s1206_s25  }
   0xe   : > { %245 = sbr.rel (%p242_p9) target bundleno = 775 (0x307), region = 48  ;;  %p273_p10 = scmp.lt.s32.totalorder (!%p242_p9), %s1305_s15, 31 }
   0xf   : > { %s876_s28 = scalar_lea.hbm (!%p242_p9), %s1445_s7, %s1305_s15  ;;  %s866_s29 = scalar_lea.sflag (!%p242_p9), [#allocation3], %s270_s19 }
  0x10   : > { %s1216_s9 = smov (!%p242_p9), [#allocation2]  }
  0x11   : > { %s1158_s13 = sshll.u32 (!%p242_p9), %s1216_s9, 4  ;;  %s1159_s13 = int_to_ptr.vmem [resolvable:$false] %s1158_s13 }
  0x12   : > { %s1160_s14 = scalar_lea.vmem (!%p242_p9), %s1159_s13, 32 }
  0x13   : > { %v1136_v0 = vld [vmem:[%s1439_s1 + $0x8] sm:$0xff]   ;;  %v1137_v1 = vld [vmem:[%s1439_s1] sm:$0xff]   ;;  %v1138_v2 = vld [vmem:[%s1441_s3 + $0x38] sm:$0xff]   ;;  %s274_s20 = scalar_select %p273_p10, %s1305_s15, 31  ;;  %vm326_vm0 = vcmask 261120  }
  0x14   : > { %1013 = vmatprep.subr.bf16.mxu0 %v1136_v0  ;;  %v1139_v3 = vld [vmem:[%s1441_s3 + $0x30] sm:$0xff]   ;;  %1033 = vmatprep.subr.bf16.mxu1 %v1138_v2  ;;  %v1140_v4 = vld [vmem:[%s1441_s3 + $0x28] sm:$0xff]   ;;  %v1141_v14 = vld [vmem:[%s1441_s3 + $0x20] sm:$0xff]  }
  0x15   : > { %1014 = vmatpush3.bf16.msra.mxu0 %v1136_v0  ;;  %s938_s23 = sshll.u32 %s274_s20, 3  ;;  %1034 = vmatpush3.bf16.msra.mxu1 %v1138_v2  ;;  %v1142_v19 = vld [vmem:[%s1441_s3 + $0x18] sm:$0xff]   ;;  %v1143_v31 = vld [vmem:[%s1441_s3 + $0x10] sm:$0xff]   ;;  %v1144_v32 = vld [vmem:[%s1441_s3 + $0x8] sm:$0xff]   ;;  %s271_s20 = scalar_lea.vmem [#allocation2], %s270_s19 }
  0x16   : > { %1015 = vmatprep.subr.bf16.mxu0 %v1137_v1  ;;  %s1321_s8 = scalar_lea.vmem %s1438_s0, %s938_s23  ;;  %1035 = vmatprep.subr.bf16.mxu1 %v1139_v3  ;;  %v1145_v33 = vld [vmem:[%s1441_s3] sm:$0xff]   ;;  %v1146_v34 = vld [vmem:[%s1443_s5 + $0x38] sm:$0xff]   ;;  %v1147_v35 = vld [vmem:[%s1443_s5 + $0x30] sm:$0xff]   ;;  %s878_s21 = sshll.u32 %s271_s20, 4  ;;  %s1399_s21 = int_to_ptr.vmem [resolvable:$true] %s878_s21 }
  0x17   : > { %v279_v5 = vld [vmem:[%s1321_s8] sm:$0xff]  ;;  %v280_v6 = vld [vmem:[%s1321_s8 + $0x8] sm:$0xff]  ;;  %v281_v7 = vld [vmem:[%s1321_s8 + $0x10] sm:$0xff]  ;;  %p1161_p0 = scmp.lt.s32.totalorder %s1399_s21, %s1159_s13 }
  0x18   : > { %v295_v8 = vpack.c.bf16 %v280_v6, %v279_v5  ;;  %v282_v9 = vld [vmem:[%s1321_s8 + $0x18] sm:$0xff]  ;;  %v283_v10 = vld [vmem:[%s1321_s8 + $0x20] sm:$0xff]  ;;  %v284_v11 = vld [vmem:[%s1321_s8 + $0x28] sm:$0xff] }
  0x19   : > { %1016 = vmatpush3.bf16.msra.mxu0 %v1137_v1  ;;  %v296_v12 = vpack.c.bf16 %v282_v9, %v281_v7  ;;  %v297_v13 = vpack.c.bf16 %v284_v11, %v283_v10  ;;  %1036 = vmatpush3.bf16.msra.mxu1 %v1139_v3  ;;  %v285_v15 = vld [vmem:[%s1321_s8 + $0x30] sm:$0xff]  ;;  %v286_v16 = vld [vmem:[%s1321_s8 + $0x38] sm:$0xff]  ;;  %v287_v17 = vld [vmem:[%s1321_s8 + $0x40] sm:$0xff] }
  0x1a   : > { %1017 = vmatprep.mubr.msk.bf16.mxu0 %vm326_vm0, %v295_v8  ;;  %1037 = vmatprep.subr.bf16.mxu1 %v1140_v4  ;;  %v288_v18 = vld [vmem:[%s1321_s8 + $0x48] sm:$0xff]  ;;  %v298_v20 = vpack.c.bf16 %v286_v16, %v285_v15  ;;  %v289_v22 = vld [vmem:[%s1321_s8 + $0x50] sm:$0xff]  ;;  %v290_v23 = vld [vmem:[%s1321_s8 + $0x58] sm:$0xff] }
  0x1b   : > { %v299_v21 = vpack.c.bf16 %v288_v18, %v287_v17  ;;  %v291_v24 = vld [vmem:[%s1321_s8 + $0x60] sm:$0xff]  ;;  %v292_v25 = vld [vmem:[%s1321_s8 + $0x68] sm:$0xff]  ;;  %v300_v26 = vpack.c.bf16 %v290_v23, %v289_v22  ;;  %v293_v28 = vld [vmem:[%s1321_s8 + $0x70] sm:$0xff]  ;;  %1065 = vmatprep.subr.bf16.mxu0 %v1146_v34 }
  0x1c   : > { %1018 = vmatmul.mubr.msk.bf16.vlgmr.msra.gmra.mxu0 %vm326_vm0, %v296_v12  ;;  %v301_v27 = vpack.c.bf16 %v292_v25, %v291_v24  ;;  %v294_v29 = vld [vmem:[%s1321_s8 + $0x78] sm:$0xff]  ;;  %v1148_v36 = vld [vmem:[%s1443_s5 + $0x28] sm:$0xff]   ;;  %v1149_v37 = vld [vmem:[%s1443_s5 + $0x20] sm:$0xff]   ;;  %s1154_s8 = scalar_lea.vmem %s1399_s21, 16 }
  0x1d   : > { %1021 = vmatprep.mubr.msk.bf16.mxu0 %vm326_vm0, %v297_v13  ;;  %1038 = vmatpush3.bf16.msra.mxu1 %v1140_v4  ;;  %v302_v30 = vpack.c.bf16 %v294_v29, %v293_v28  ;;  %v1150_v38 = vld [vmem:[%s1443_s5 + $0x18] sm:$0xff]   ;;  %v939_v41 = vld [vmem:[%s1440_s2] ss:$0 sm:$0xff]  ;;  %p1155_p11 = scmp.ne.s32.totalorder %s1399_s21, %s1154_s8  ;;  %p1162_p1 = scmp.lt.s32.totalorder %s1160_s14, %s1154_s8 }
  0x1e   : > { %1039 = vmatprep.subr.bf16.mxu1 %v1141_v14  ;;  %1066 = vmatpush3.bf16.msra.mxu0 %v1146_v34  ;;  %v1153_v34 = vld [vmem:[%s1443_s5] sm:$0xff]  }
  0x1f   : > { %1067 = vmatprep.subr.bf16.mxu0 %v1147_v35  ;;  %p1156_p12 = pnand %p1155_p11, %p1292_p5  ;;  %p1163_p2 = por %p1162_p1, %p1161_p0 }
  0x21   : > { %1040 = vmatpush3.bf16.msra.mxu1 %v1141_v14  ;;  %p1157_p13 = pneg %p1156_p12 }
  0x22   : > { %1041 = vmatprep.subr.bf16.mxu1 %v1142_v19  ;;  %1068 = vmatpush3.bf16.msra.mxu0 %v1147_v35 }
  0x23   : > { %1069 = vmatprep.subr.bf16.mxu0 %v1148_v36  ;;  %p1164_p3 = pnand %p1163_p2, %p1157_p13 }
  0x24   : > { %1022 = vmatmul.mubr.msk.bf16.gmra.mxu0 %vm326_vm0, %v298_v20 }
  0x25   : > { %1025 = vmatprep.mubr.msk.bf16.mxu0 %vm326_vm0, %v299_v21  ;;  %1042 = vmatpush3.bf16.msra.mxu1 %v1142_v19 }
  0x26   : > { %1043 = vmatprep.subr.bf16.mxu1 %v1143_v31  ;;  %1070 = vmatpush3.bf16.msra.mxu0 %v1148_v36 }
  0x27   : > { %1071 = vmatprep.subr.bf16.mxu0 %v1149_v37 }
  0x29   : > { %1044 = vmatpush3.bf16.msra.mxu1 %v1143_v31 }
  0x2a   : > { %1045 = vmatprep.subr.bf16.mxu1 %v1144_v32  ;;  %1072 = vmatpush3.bf16.msra.mxu0 %v1149_v37  ;;  %v950_v37 = vld [vmem:[%s1442_s4] ss:$0 sm:$0xff] }
  0x2b   : > { %1073 = vmatprep.subr.bf16.mxu0 %v1150_v38 }
  0x2c   : > { %1026 = vmatmul.mubr.msk.bf16.gmra.mxu0 %vm326_vm0, %v300_v26 }
  0x2d   : > { %1029 = vmatprep.mubr.msk.bf16.mxu0 %vm326_vm0, %v301_v27  ;;  %1046 = vmatpush3.bf16.msra.mxu1 %v1144_v32  ;;  %v1151_v32 = vld [vmem:[%s1443_s5 + $0x10] sm:$0xff]  }
  0x2e   : > { %1047 = vmatprep.subr.bf16.mxu1 %v1145_v33  ;;  %1074 = vmatpush3.bf16.msra.mxu0 %v1150_v38 }
  0x2f   : > { %1075 = vmatprep.subr.bf16.mxu0 %v1151_v32 }
  0x31   : > { %1048 = vmatpush3.bf16.msra.mxu1 %v1145_v33  ;;  %v1152_v33 = vld [vmem:[%s1443_s5 + $0x8] sm:$0xff]  }
  0x32   : > { %1076 = vmatpush3.bf16.msra.mxu0 %v1151_v32 }
  0x33   : > { %1077 = vmatprep.subr.bf16.mxu0 %v1152_v33 }
  0x34   : > { %1030 = vmatmul.mubr.msk.bf16.gmra.mxu0 %vm326_vm0, %v302_v30 }
  0x36   : > { %1078 = vmatpush3.bf16.msra.mxu0 %v1152_v33 }
  0x37   : > { %1079 = vmatprep.subr.bf16.mxu0 %v1153_v34 }
  0x3a   : > { %1080 = vmatpush3.bf16.msra.mxu0 %v1153_v34 }
  0xdc   : > { %v1019_v39 = vpop.f32.mrf.mxu0 }
  0xdd   : > { %v394_v45 = vadd.f32 %v1019_v39, %v939_v41 }
  0xde   : > { %v385_v40 = vpop.f32.mrf.mxu0 }
  0xdf   : > { %v386_v43 = vadd.f32 %v939_v41, %v385_v40  ;;  %v450_v52 = vmax.f32 %v394_v45, 0.0 }
  0xe0   : > { %v1020_v42 = vpop.f32.mrf.mxu0 }
  0xe1   : > { %v397_v44 = vadd.f32 %v1020_v42, %v939_v41  ;;  %v448_v50 = vmax.f32 %v386_v43, 0.0 }
  0xe2   : > { %v388_v46 = vpop.f32.mrf.mxu0 }
  0xe3   : > { %v389_v47 = vadd.f32 %v939_v41, %v388_v46  ;;  %v451_v48 = vmax.f32 %v397_v44, 0.0 }
  0xe4   : > { %v1023_v49 = vpop.f32.mrf.mxu0 }
  0xe5   : > { %v449_v51 = vmax.f32 %v389_v47, 0.0  ;;  %v410_v53 = vadd.f32 %v1023_v49, %v939_v41  ;;  %v465_v57 = vpack.c.bf16 %v451_v48, %v450_v52 }
  0xe6   : > { %v401_v54 = vpop.f32.mrf.mxu0 }
  0xe7   : > { %v402_v55 = vadd.f32 %v939_v41, %v401_v54  ;;  %v464_v56 = vpack.c.bf16 %v449_v51, %v448_v50  ;;  %v454_v60 = vmax.f32 %v410_v53, 0.0 }
  0xe8   : > { %v1024_v58 = vpop.f32.mrf.mxu0 }
  0xe9   : > { %v413_v59 = vadd.f32 %v1024_v58, %v939_v41  ;;  %1049 = vmatprep.mubr.bf16.mxu1 %v464_v56  ;;  %v452_v62 = vmax.f32 %v402_v55, 0.0 }
  0xea   : > { %v404_v61 = vpop.f32.mrf.mxu0  ;;  %1050 = vmatmul.mubr.bf16.vlgmr.msra.gmra.mxu1 %v465_v57 }
  0xeb   : > { %v455_v63 = vmax.f32 %v413_v59, 0.0  ;;  %v405_v0 = vadd.f32 %v939_v41, %v404_v61 }
  0xec   : > { %v1027_v1 = vpop.f32.mrf.mxu0 }
  0xed   : > { %v453_v2 = vmax.f32 %v405_v0, 0.0  ;;  %v467_v3 = vpack.c.bf16 %v455_v63, %v454_v60  ;;  %v426_v4 = vadd.f32 %v1027_v1, %v939_v41 }
  0xee   : > { %v417_v5 = vpop.f32.mrf.mxu0 }
  0xef   : > { %v466_v6 = vpack.c.bf16 %v453_v2, %v452_v62  ;;  %v418_v7 = vadd.f32 %v939_v41, %v417_v5  ;;  %v458_v10 = vmax.f32 %v426_v4, 0.0 }
  0xf0   : > { %v1028_v8 = vpop.f32.mrf.mxu0 }
  0xf1   : > { %v429_v9 = vadd.f32 %v1028_v8, %v939_v41  ;;  %1053 = vmatprep.mubr.bf16.mxu1 %v466_v6  ;;  %v456_v12 = vmax.f32 %v418_v7, 0.0 }
  0xf2   : > { %v420_v11 = vpop.f32.mrf.mxu0  ;;  %1054 = vmatmul.mubr.bf16.gmra.mxu1 %v467_v3 }
  0xf3   : > { %v459_v13 = vmax.f32 %v429_v9, 0.0  ;;  %v421_v14 = vadd.f32 %v939_v41, %v420_v11 }
  0xf4   : > { %v1031_v15 = vpop.f32.mrf.mxu0 }
  0xf5   : > { %v457_v16 = vmax.f32 %v421_v14, 0.0  ;;  %v469_v17 = vpack.c.bf16 %v459_v13, %v458_v10  ;;  %v442_v18 = vadd.f32 %v1031_v15, %v939_v41 }
  0xf6   : > { %v433_v19 = vpop.f32.mrf.mxu0 }
  0xf7   : > { %v468_v20 = vpack.c.bf16 %v457_v16, %v456_v12  ;;  %v434_v21 = vadd.f32 %v939_v41, %v433_v19  ;;  %v462_v24 = vmax.f32 %v442_v18, 0.0 }
  0xf8   : > { %v1032_v22 = vpop.f32.mrf.mxu0 }
  0xf9   : > { %1057 = vmatprep.mubr.bf16.mxu1 %v468_v20  ;;  %v445_v23 = vadd.f32 %v1032_v22, %v939_v41  ;;  %v460_v26 = vmax.f32 %v434_v21, 0.0 }
  0xfa   : > { %1058 = vmatmul.mubr.bf16.gmra.mxu1 %v469_v17  ;;  %v436_v25 = vpop.f32.mrf.mxu0 }
  0xfb   : > { %v463_v27 = vmax.f32 %v445_v23, 0.0  ;;  %v437_v28 = vadd.f32 %v939_v41, %v436_v25 }
  0xfd   : > { %v461_v29 = vmax.f32 %v437_v28, 0.0  ;;  %v471_v30 = vpack.c.bf16 %v463_v27, %v462_v24 }
  0xff   : > { %v470_v31 = vpack.c.bf16 %v461_v29, %v460_v26  ;;  %v959_v29 = vld [vmem:[%s1444_s6] ss:$0 sm:$0xff] }
 0x101   : > { %1061 = vmatprep.mubr.bf16.mxu1 %v470_v31 }
 0x102   : > { %1062 = vmatmul.mubr.bf16.gmra.mxu1 %v471_v30 }
 0x1aa   : > { %v1051_v35 = vpop.f32.mrf.mxu1 }
 0x1ab   : > { %v586_v41 = vadd.f32 %v1051_v35, %v950_v37 }
 0x1ac   : > { %v577_v36 = vpop.f32.mrf.mxu1 }
 0x1ad   : > { %v578_v39 = vadd.f32 %v950_v37, %v577_v36  ;;  %v642_v48 = vmax.f32 %v586_v41, 0.0 }
 0x1ae   : > { %v1052_v38 = vpop.f32.mrf.mxu1 }
 0x1af   : > { %v589_v40 = vadd.f32 %v1052_v38, %v950_v37  ;;  %v640_v46 = vmax.f32 %v578_v39, 0.0 }
 0x1b0   : > { %v580_v42 = vpop.f32.mrf.mxu1 }
 0x1b1   : > { %v581_v43 = vadd.f32 %v950_v37, %v580_v42  ;;  %v643_v44 = vmax.f32 %v589_v40, 0.0 }
 0x1b2   : > { %v1055_v45 = vpop.f32.mrf.mxu1 }
 0x1b3   : > { %v641_v47 = vmax.f32 %v581_v43, 0.0  ;;  %v657_v51 = vpack.c.bf16 %v643_v44, %v642_v48  ;;  %v602_v55 = vadd.f32 %v1055_v45, %v950_v37 }
 0x1b4   : > { %v593_v49 = vpop.f32.mrf.mxu1 }
 0x1b5   : > { %v656_v50 = vpack.c.bf16 %v641_v47, %v640_v46  ;;  %v594_v53 = vadd.f32 %v950_v37, %v593_v49  ;;  %v646_v62 = vmax.f32 %v602_v55, 0.0 }
 0x1b6   : > { %v1056_v52 = vpop.f32.mrf.mxu1 }
 0x1b7   : > { %v605_v54 = vadd.f32 %v1056_v52, %v950_v37  ;;  %1081 = vmatprep.mubr.bf16.mxu0 %v656_v50  ;;  %v644_v60 = vmax.f32 %v594_v53, 0.0 }
 0x1b8   : > { %v596_v56 = vpop.f32.mrf.mxu1  ;;  %1082 = vmatmul.mubr.bf16.vlgmr.msra.gmra.mxu0 %v657_v51 }
 0x1b9   : > { %v597_v57 = vadd.f32 %v950_v37, %v596_v56  ;;  %v647_v58 = vmax.f32 %v605_v54, 0.0 }
 0x1ba   : > { %v1059_v59 = vpop.f32.mrf.mxu1 }
 0x1bb   : > { %v645_v61 = vmax.f32 %v597_v57, 0.0  ;;  %v618_v63 = vadd.f32 %v1059_v59, %v950_v37  ;;  %v659_v3 = vpack.c.bf16 %v647_v58, %v646_v62 }
 0x1bc   : > { %v609_v0 = vpop.f32.mrf.mxu1 }
 0x1bd   : > { %v658_v1 = vpack.c.bf16 %v645_v61, %v644_v60  ;;  %v610_v2 = vadd.f32 %v950_v37, %v609_v0  ;;  %v650_v6 = vmax.f32 %v618_v63, 0.0 }
 0x1be   : > { %v1060_v4 = vpop.f32.mrf.mxu1 }
 0x1bf   : > { %v621_v5 = vadd.f32 %v1060_v4, %v950_v37  ;;  %1085 = vmatprep.mubr.bf16.mxu0 %v658_v1  ;;  %v648_v8 = vmax.f32 %v610_v2, 0.0 }
 0x1c0   : > { %v612_v7 = vpop.f32.mrf.mxu1  ;;  %1086 = vmatmul.mubr.bf16.gmra.mxu0 %v659_v3 }
 0x1c1   : > { %v651_v9 = vmax.f32 %v621_v5, 0.0  ;;  %v613_v10 = vadd.f32 %v950_v37, %v612_v7 }
 0x1c2   : > { %v1063_v11 = vpop.f32.mrf.mxu1 }
 0x1c3   : > { %v649_v12 = vmax.f32 %v613_v10, 0.0  ;;  %v661_v13 = vpack.c.bf16 %v651_v9, %v650_v6  ;;  %v634_v14 = vadd.f32 %v1063_v11, %v950_v37 }
 0x1c4   : > { %v625_v15 = vpop.f32.mrf.mxu1 }
 0x1c5   : > { %v660_v16 = vpack.c.bf16 %v649_v12, %v648_v8  ;;  %v626_v17 = vadd.f32 %v950_v37, %v625_v15  ;;  %v654_v20 = vmax.f32 %v634_v14, 0.0 }
 0x1c6   : > { %v1064_v18 = vpop.f32.mrf.mxu1 }
 0x1c7   : > { %1089 = vmatprep.mubr.bf16.mxu0 %v660_v16  ;;  %v637_v19 = vadd.f32 %v1064_v18, %v950_v37  ;;  %v652_v22 = vmax.f32 %v626_v17, 0.0 }
 0x1c8   : > { %1090 = vmatmul.mubr.bf16.gmra.mxu0 %v661_v13  ;;  %v628_v21 = vpop.f32.mrf.mxu1 }
 0x1c9   : > { %v655_v23 = vmax.f32 %v637_v19, 0.0  ;;  %v629_v24 = vadd.f32 %v950_v37, %v628_v21 }
 0x1cb   : > { %v653_v25 = vmax.f32 %v629_v24, 0.0  ;;  %v663_v26 = vpack.c.bf16 %v655_v23, %v654_v20 }
 0x1cd   : > { %v662_v27 = vpack.c.bf16 %v653_v25, %v652_v22 }
 0x1cf   : > { %1093 = vmatprep.mubr.bf16.mxu0 %v662_v27 }
 0x1d0   : > { %1094 = vmatmul.mubr.bf16.gmra.mxu0 %v663_v26 }
 0x278   : > { %v1083_v28 = vpop.f32.mrf.mxu0 }
 0x279   : > { %v778_v36 = vadd.f32 %v1083_v28, %v959_v29 }
 0x27a   : > { %v769_v30 = vpop.f32.mrf.mxu0 }
 0x27b   : > { %v770_v31 = vadd.f32 %v959_v29, %v769_v30 }
 0x27c   : > { %v1084_v32 = vpop.f32.mrf.mxu0 }
 0x27d   : > { %832 = vxpose.xlu0.b32.start [1/16] (narrow) %v770_v31, 8  ;;  %v781_v38 = vadd.f32 %v1084_v32, %v959_v29 }
 0x27e   : > { %v772_v33 = vpop.f32.mrf.mxu0 }
 0x27f   : > { %v773_v34 = vadd.f32 %v959_v29, %v772_v33 }
 0x280   : > { %v1087_v35 = vpop.f32.mrf.mxu0 }
 0x281   : > { %833 = vxpose.xlu0.b32.cont [2/16] (narrow) %v773_v34, 8  ;;  %v794_v44 = vadd.f32 %v1087_v35, %v959_v29 }
 0x282   : > { %v785_v37 = vpop.f32.mrf.mxu0 }
 0x283   : > { %v786_v40 = vadd.f32 %v959_v29, %v785_v37 }
 0x284   : > { %v1088_v39 = vpop.f32.mrf.mxu0 }
 0x285   : > { %834 = vxpose.xlu0.b32.cont [3/16] (narrow) %v778_v36, 8  ;;  %v797_v46 = vadd.f32 %v1088_v39, %v959_v29 }
 0x286   : > { %v788_v41 = vpop.f32.mrf.mxu0 }
 0x287   : > { %v789_v42 = vadd.f32 %v959_v29, %v788_v41 }
 0x288   : > { %v1091_v43 = vpop.f32.mrf.mxu0 }
 0x289   : > { %835 = vxpose.xlu0.b32.cont [4/16] (narrow) %v781_v38, 8  ;;  %v810_v52 = vadd.f32 %v1091_v43, %v959_v29 }
 0x28a   : > { %v801_v45 = vpop.f32.mrf.mxu0 }
 0x28b   : > { %v802_v48 = vadd.f32 %v959_v29, %v801_v45 }
 0x28c   : > { %v1092_v47 = vpop.f32.mrf.mxu0 }
 0x28d   : > { %836 = vxpose.xlu0.b32.cont [5/16] (narrow) %v786_v40, 8  ;;  %v813_v54 = vadd.f32 %v1092_v47, %v959_v29 }
 0x28e   : > { %v804_v49 = vpop.f32.mrf.mxu0 }
 0x28f   : > { %v805_v50 = vadd.f32 %v959_v29, %v804_v49 }
 0x290   : > { %v1095_v51 = vpop.f32.mrf.mxu0 }
 0x291   : > { %837 = vxpose.xlu0.b32.cont [6/16] (narrow) %v789_v42, 8  ;;  %v826_v59 = vadd.f32 %v1095_v51, %v959_v29 }
 0x292   : > { %v817_v53 = vpop.f32.mrf.mxu0 }
 0x293   : > { %v818_v56 = vadd.f32 %v959_v29, %v817_v53 }
 0x294   : > { %v1096_v55 = vpop.f32.mrf.mxu0 }
 0x295   : > { %838 = vxpose.xlu0.b32.cont [7/16] (narrow) %v794_v44, 8  ;;  %v829_v60 = vadd.f32 %v1096_v55, %v959_v29 }
 0x296   : > { %v820_v57 = vpop.f32.mrf.mxu0 }
 0x297   : > { %v821_v58 = vadd.f32 %v959_v29, %v820_v57 }
 0x299   : > { %839 = vxpose.xlu0.b32.cont [8/16] (narrow) %v797_v46, 8 }
 0x29d   : > { %840 = vxpose.xlu0.b32.cont [9/16] (narrow) %v802_v48, 8 }
 0x2a1   : > { %841 = vxpose.xlu0.b32.cont [10/16] (narrow) %v805_v50, 8 }
 0x2a5   : > { %842 = vxpose.xlu0.b32.cont [11/16] (narrow) %v810_v52, 8 }
 0x2a9   : > { %843 = vxpose.xlu0.b32.cont [12/16] (narrow) %v813_v54, 8 }
 0x2ad   : > { %844 = vxpose.xlu0.b32.cont [13/16] (narrow) %v818_v56, 8 }
 0x2b1   : > { %845 = vxpose.xlu0.b32.cont [14/16] (narrow) %v821_v58, 8 }
 0x2b5   : > { %846 = vxpose.xlu0.b32.cont [15/16] (narrow) %v826_v59, 8 }
 0x2b9   : > { %847 = vxpose.xlu0.b32.end [16/16] (narrow) %v829_v60, 8 }
 0x2f9   : > { %v848_v61 = vpop.trf.xlu0 }
 0x2fa   : > { %864 = vst [vmem:[%s271_s20] sm:$0x1] %v848_v61 }
 0x2fb   : > { %1167 = shalt.err (!%p1164_p3)
}
 0x2fc   : > { %s1168_s16 = scalar_lea.hbm %s876_s28, 16  ;;  %s1172_s18 = scalar_lea.hbm %s1445_s7, 32 }
 0x2fd   : > { %p1169_p4 = scmp.ne.s32.totalorder %s876_s28, %s1168_s16  ;;  %p1173_p9 = scmp.lt.s32.totalorder %s876_s28, %s1445_s7 }
 0x2fe   : > { %p1174_p10 = scmp.lt.s32.totalorder %s1172_s18, %s1168_s16 }
 0x2ff   : > { %p1170_p7 = pnand %p1169_p4, %p1292_p5 }
 0x300   : > { %p1175_p11 = por %p1174_p10, %p1173_p9 }
 0x301   : > { %p1171_p8 = pneg %p1170_p7 }
 0x303   : > { %p1176_p12 = pnand %p1175_p11, %p1171_p8 }
 0x305   : > { %1179 = shalt.err (!%p1176_p12)
}
 0x306   : > { %1097 = dma.vmem_to_hbm [thread:$0]  (%p1292_p5), %s1399_s21, 16, %s876_s28, %s866_s29  }
 0x307 PF: > { %p1103_p13 = scmp.ge.s32.totalorder %s1214_s27, 2  ;;  %s890_s22 = sand.u32 1, %s1202_s24  }
 0x308   : > { %s891_s23 = scalar_lea.sflag [#allocation3], %s890_s22 }
 0x309   : > { %p1100_p0 = pnand %p1103_p13, %p1296_p6 }
 0x30b   : > { %p1101_p1 = pneg %p1100_p0 }
 0x30d   : > { %1197 = dma.done.wait (%p1101_p1), %s891_s23, 16  }
 0x30e   : > { %1199 = vsyncadd (%p1101_p1), %s891_s23, 4294967280  ;;  %p17_p2 = scmp.ge.s32.totalorder %s1280_s30, 4   ;;  %s1448_s24 = smov %s1206_s25 }
 0x30f   : > { %s1449_s25 = smov %s1210_s26  ;;  %s1450_s26 = smov %s1290_s10 }
 0x310   : > { %s1451_s27 = smov %s1280_s30  ;;  %19 = sbr.rel (!%p17_p2) target bundleno = 3 (0x3), region = 83 }
 0x315   :  { %895 = vsyncpa [#allocation3], 1 }
 0x316   :  { %897 = vsyncpa [#allocation3 + $0x1], 1 }

</bundles_post_ra>
